<compile_context>
chip_gen: v5e
topology: v5e:2x2
jax: 0.10.0
libtpu: 0.0.40
codegen_flags: <defaults>
</compile_context>

<pallas_src>
import functools

import numpy as np
import jax
import jax.numpy as jnp
from jax import lax
from jax.experimental import pallas as pl
from jax.experimental.pallas import tpu as pltpu


_LANE = 128                  # feature dim padded to a multiple of the 128-lane vreg
_TN_MAX = 64                 # max node rows per tile (multiple of 8); static unroll
_DMA_TN = 8                  # node rows per tile for the DMA-gather fallback
_VMEM_LIMIT = 32 * 1024 * 1024           # scoped VMEM request (safe on v5e/v6e/v7x)
_RESIDENT_TABLE_BYTES = 12 * 1024 * 1024  # table budget for the VMEM-resident path
                                          # (x2 double-buffering still < _VMEM_LIMIT)


def _round_up(x, m):
    return (x + m - 1) // m * m


def _choose_node_tile(n):
    """Pick the node-tile height TN (multiple of 8) and the padded node count."""
    n8 = _round_up(max(n, 1), 8)
    tn = min(_TN_MAX, n8)
    # Prefer >= 2 tiles so ("parallel",) can shard the grid over v7x's two TCs.
    if n8 > 8 and n8 // tn < 2:
        tn = min(_TN_MAX, _round_up((n8 + 1) // 2, 8))
    n_pad = _round_up(n8, tn)
    return tn, n_pad


# --------------------------------------------------------------------------------
# Primary path: VMEM-resident feature table + in-VMEM row gather.
# --------------------------------------------------------------------------------
def _resident_mean_kernel(idx_ref, invcnt_ref, feat_ref, out_ref, *, tn, s, d_pad):
    """One node tile: gather sampled rows from the resident table and mean-reduce.

    idx_ref   : SMEM (n_pad*s,) int32    flattened sampled feature-row ids (scalar
                                         prefetch); padded/empty slots -> zero row.
    invcnt_ref: VMEM (tn, 1)   float32   1 / number-of-valid-samples per node.
    feat_ref  : VMEM (M+1, d_pad) f32    feature table (+ trailing all-zeros row);
                                         constant index_map -> resident across grid.
    out_ref   : VMEM (tn, d_pad)  f32    aggregated output tile.
    """
    t = pl.program_id(0)
    base = t * tn * s

    # Static unroll over the tn node rows (static sublane store offsets; independent
    # rows give the VPU plenty of ILP).  The sample axis uses fori_loop so code size
    # stays bounded even when num_samples=-1 makes s large.
    for j in range(tn):
        row_base = base + j * s

        def body(k, acc, row_base=row_base):
            r = idx_ref[row_base + k]
            return acc + feat_ref[pl.ds(r, 1), :]

        acc = lax.fori_loop(0, s, body, jnp.zeros((1, d_pad), jnp.float32))
        out_ref[pl.ds(j, 1), :] = (acc * invcnt_ref[pl.ds(j, 1), :]).astype(
            out_ref.dtype)


def _pallas_resident_mean(idx_flat, invcnt, features_padded, n_pad, d_pad, s, tn):
    nt = n_pad // tn
    m_rows = features_padded.shape[0]
    kernel = functools.partial(_resident_mean_kernel, tn=tn, s=s, d_pad=d_pad)
    grid_spec = pltpu.PrefetchScalarGridSpec(
        num_scalar_prefetch=1,                                   # idx_flat -> SMEM
        grid=(nt,),
        in_specs=[
            pl.BlockSpec((tn, 1), lambda t, idx: (t, 0)),        # invcnt tile
            pl.BlockSpec((m_rows, d_pad), lambda t, idx: (0, 0)),  # resident table
        ],
        out_specs=pl.BlockSpec((tn, d_pad), lambda t, idx: (t, 0)),
    )
    return pl.pallas_call(
        kernel,
        out_shape=jax.ShapeDtypeStruct((n_pad, d_pad), jnp.float32),
        grid_spec=grid_spec,
        compiler_params=pltpu.CompilerParams(
            dimension_semantics=("parallel",),    # node tiles are independent
            vmem_limit_bytes=_VMEM_LIMIT,         # explicit: v5e default is 16 MiB
        ),
    )(idx_flat, invcnt, features_padded)


# --------------------------------------------------------------------------------
# Fallback path (large tables): scalar-prefetch driven per-row HBM DMA gather.
# (Kept structurally identical to the previously validated kernel.)
# --------------------------------------------------------------------------------
def _dma_gather_mean_kernel(idx_ref, invcnt_ref, feat_hbm, out_ref, rowbuf, sems):
    """Per node tile: DMA-gather the sampled feature rows and mean-reduce them."""
    t = pl.program_id(0)
    n_samples, tn, _ = rowbuf.shape
    base = t * tn * n_samples

    # Issue the whole gather burst so the row DMAs overlap each other.
    for k in range(n_samples):
        for j in range(tn):
            row = idx_ref[base + j * n_samples + k]
            pltpu.make_async_copy(feat_hbm.at[row], rowbuf.at[k, j],
                                  sems.at[k, j]).start()

    # Wait for every row of this tile.  (Descriptor rebuilt with row 0: valid only
    # because every feature row has identical shape/dtype.)
    for k in range(n_samples):
        for j in range(tn):
            pltpu.make_async_copy(feat_hbm.at[0], rowbuf.at[k, j],
                                  sems.at[k, j]).wait()

    acc = rowbuf[0]
    for k in range(1, n_samples):
        acc = acc + rowbuf[k]
    out_ref[...] = (acc * invcnt_ref[...]).astype(out_ref.dtype)


def _pallas_dma_gather_mean(idx_flat, invcnt, features_padded, n_pad, d_pad, s):
    nt = n_pad // _DMA_TN
    grid_spec = pltpu.PrefetchScalarGridSpec(
        num_scalar_prefetch=1,                          # idx_flat -> SMEM
        grid=(nt,),
        in_specs=[
            pl.BlockSpec((_DMA_TN, 1), lambda t, idx: (t, 0)),   # invcnt tile
            pl.BlockSpec(memory_space=pl.ANY),                   # features stay in HBM
        ],
        out_specs=pl.BlockSpec((_DMA_TN, d_pad), lambda t, idx: (t, 0)),
        scratch_shapes=[
            pltpu.VMEM((s, _DMA_TN, d_pad), jnp.float32),        # gather landing buf
            pltpu.SemaphoreType.DMA((s, _DMA_TN)),
        ],
    )
    return pl.pallas_call(
        _dma_gather_mean_kernel,
        out_shape=jax.ShapeDtypeStruct((n_pad, d_pad), jnp.float32),
        grid_spec=grid_spec,
        compiler_params=pltpu.CompilerParams(
            dimension_semantics=("parallel",),
            vmem_limit_bytes=_VMEM_LIMIT,
        ),
    )(idx_flat, invcnt, features_padded)


# --------------------------------------------------------------------------------
# Module wrapper
# --------------------------------------------------------------------------------
class MeanAggregator:
    """JAX/Pallas port of sage.py Aggregator with a mean `_aggregate`."""

    def __init__(self, input_dim=None, output_dim=None):
        self.input_dim = input_dim
        self.output_dim = output_dim
        self._feat_cache = None   # (key, padded device table) across forward() calls

    def _get_padded_features(self, features, m, d, d_pad):
        # Cache the padded (M+1, d_pad) table + its device copy across calls
        # (keyed on object identity + shape; rebuild if the caller swaps tables).
        key = (id(features), m, d, d_pad)
        if self._feat_cache is not None and self._feat_cache[0] == key:
            return self._feat_cache[1]
        feats = np.asarray(features, dtype=np.float32)
        feats_pad = np.zeros((m + 1, d_pad), dtype=np.float32)   # +1 all-zeros row
        feats_pad[:m, :d] = feats
        feats_dev = jnp.asarray(feats_pad)
        self._feat_cache = (key, feats_dev)
        return feats_dev

    def forward(self, features, nodes, mapping, rows, num_samples=25):
        # ---- host-side glue (ragged, data-dependent): id->row mapping + sampling ----
        mapped_rows = [np.array([mapping[v] for v in row], dtype=np.int64)
                       for row in rows]
        if num_samples == -1:
            sampled_rows = mapped_rows
            s = max(1, max((len(r) for r in mapped_rows), default=1))
        else:
            sampled_rows = [
                np.random.choice(row, min(len(row), num_samples),
                                 len(row) < num_samples)
                if len(row) > 0 else row
                for row in mapped_rows
            ]
            s = max(1, num_samples)   # fixed sample axis -> stable kernel shapes

        m, d = np.shape(features)
        n = len(nodes)
        d_pad = _round_up(max(d, _LANE), _LANE)         # lane-dense output blocks
        feats_dev = self._get_padded_features(features, m, d, d_pad)

        table_bytes = (m + 1) * d_pad * 4
        use_resident = table_bytes <= _RESIDENT_TABLE_BYTES

        if use_resident:
            tn, n_pad = _choose_node_tile(n)
        else:
            tn, n_pad = _DMA_TN, _round_up(max(n, _DMA_TN), _DMA_TN)

        # Sampled row ids (padded/empty slots -> the trailing zero row `m`) and the
        # host-precomputed 1/count per node (no in-kernel divide).
        idx = np.full((n_pad, s), m, dtype=np.int32)
        invcnt = np.ones((n_pad, 1), dtype=np.float32)
        for i, r in enumerate(sampled_rows):
            if len(r) != 0:
                idx[i, :len(r)] = np.asarray(r, dtype=np.int32)
                invcnt[i, 0] = 1.0 / float(len(r))

        idx_flat = jnp.asarray(idx.reshape(-1))          # 1-D int32 SMEM prefetch
        invcnt_dev = jnp.asarray(invcnt)

        if use_resident:
            out = _pallas_resident_mean(idx_flat, invcnt_dev, feats_dev,
                                        n_pad, d_pad, s, tn)
        else:
            out = _pallas_dma_gather_mean(idx_flat, invcnt_dev, feats_dev,
                                          n_pad, d_pad, s)
        return out[:n, :d]


if __name__ == "__main__":
    # deterministic setup
    np.random.seed(0)
    key = jax.random.PRNGKey(0)

    M, D = 16, 32           # feature rows, feature dim
    N = 8                   # number of output nodes
    num_samples = 4

    features = jax.random.normal(key, (M, D), dtype=jnp.float32)

    nodes = list(range(N))
    mapping = {v: v for v in range(M)}          # node id -> feature row
    rows = [
        [1, 2, 3],
        [0, 4, 5, 6, 7],
        [8],
        [],                                     # node with no neighbours
        [9, 10, 11, 12],
        [13, 14],
        [15, 0, 1],
        [2, 3, 4, 5, 6, 7, 8, 9],
    ]

    agg = MeanAggregator(input_dim=D, output_dim=D)

    # reference: replay the exact sampling the module does (same seed / order)
    np.random.seed(0)
    mapped = [np.array([mapping[v] for v in row], dtype=np.int64) for row in rows]
    sampled_ref = [
        np.random.choice(r, min(len(r), num_samples), len(r) < num_samples)
        if len(r) > 0 else r
        for r in mapped
    ]
    ref = np.zeros((N, D), dtype=np.float32)
    feats_np = np.asarray(features)
    for i, r in enumerate(sampled_ref):
        if len(r) != 0:
            ref[i, :] = feats_np[r, :].mean(axis=0)

    # run the kernel with the identical sampling (reset the seed)
    np.random.seed(0)
    out = agg.forward(features, nodes, mapping, rows, num_samples=num_samples)
    out = jax.block_until_ready(out)

    np.testing.assert_allclose(np.asarray(out), ref, rtol=1e-5, atol=1e-5)
    print("KERNEL_OK")
</pallas_src>

<mosaic_0001>
module attributes {stable_mosaic.version = 11 : i64} {
  func.func @_resident_mean_kernel(%arg0: i32, %arg1: memref<32xi32, #tpu.memory_space<smem>>, %arg2: memref<8x1xf32, #tpu.memory_space<vmem>>, %arg3: memref<17x128xf32, #tpu.memory_space<vmem>>, %arg4: memref<8x128xf32, #tpu.memory_space<vmem>>) attributes {dimension_semantics = [#tpu.dimension_semantics<parallel>], iteration_bounds = array<i64: 1>, scalar_prefetch = 1 : i64, scratch_operands = 0 : i64, tpu.core_type = #tpu.core_type<tc>, window_params = [{transform_indices = @transform_0, window_bounds = array<i64: 8, 1>}, {pipeline_mode = #tpu.pipeline_mode<synchronous>, transform_indices = @transform_1, window_bounds = array<i64: 17, 128>}, {transform_indices = @transform_2, window_bounds = array<i64: 8, 128>}]} {
    %c8_i32 = arith.constant 8 : i32
    %0 = arith.muli %arg0, %c8_i32 : i32
    %c4_i32 = arith.constant 4 : i32
    %1 = arith.muli %0, %c4_i32 : i32
    %c0_i32 = arith.constant 0 : i32
    %2 = arith.addi %1, %c0_i32 : i32
    %cst = arith.constant 0.000000e+00 : f32
    %3 = vector.broadcast %cst : f32 to vector<1x128xf32>
    %c0_i32_0 = arith.constant 0 : i32
    %c4_i32_1 = arith.constant 4 : i32
    %4 = arith.addi %c0_i32_0, %c4_i32_1 : i32
    %c1_i32 = arith.constant 1 : i32
    %5 = scf.for %arg5 = %c0_i32_0 to %4 step %c1_i32 iter_args(%arg6 = %3) -> (vector<1x128xf32>)  : i32 {
      %66 = arith.addi %2, %arg5 : i32
      %67 = arith.index_cast %66 : i32 to index
      %68 = memref.load %arg1[%67] : memref<32xi32, #tpu.memory_space<smem>>
      %69 = arith.index_cast %68 : i32 to index
      %c0_64 = arith.constant 0 : index
      %70 = vector.load %arg3[%69, %c0_64] : memref<17x128xf32, #tpu.memory_space<vmem>>, vector<1x128xf32>
      %71 = arith.addf %arg6, %70 : vector<1x128xf32>
      scf.yield %71 : vector<1x128xf32>
    }
    %c4_i32_2 = arith.constant 4 : i32
    %c0 = arith.constant 0 : index
    %c0_3 = arith.constant 0 : index
    %6 = vector.load %arg2[%c0, %c0_3] : memref<8x1xf32, #tpu.memory_space<vmem>>, vector<1x1xf32>
    %7 = vector.broadcast %6 : vector<1x1xf32> to vector<1x128xf32>
    %8 = arith.mulf %5, %7 : vector<1x128xf32>
    %c0_4 = arith.constant 0 : index
    %c0_5 = arith.constant 0 : index
    %9 = vector.load %arg4[%c0_4, %c0_5] : memref<8x128xf32, #tpu.memory_space<vmem>>, vector<1x128xf32>
    tpu.vector_store %arg4[%c0_4, %c0_5], %8 {strides = array<i32>} : memref<8x128xf32, #tpu.memory_space<vmem>>, vector<1x128xf32>,
    %c4_i32_6 = arith.constant 4 : i32
    %10 = arith.addi %1, %c4_i32_6 : i32
    %cst_7 = arith.constant 0.000000e+00 : f32
    %11 = vector.broadcast %cst_7 : f32 to vector<1x128xf32>
    %c0_i32_8 = arith.constant 0 : i32
    %c4_i32_9 = arith.constant 4 : i32
    %12 = arith.addi %c0_i32_8, %c4_i32_9 : i32
    %c1_i32_10 = arith.constant 1 : i32
    %13 = scf.for %arg5 = %c0_i32_8 to %12 step %c1_i32_10 iter_args(%arg6 = %11) -> (vector<1x128xf32>)  : i32 {
      %66 = arith.addi %10, %arg5 : i32
      %67 = arith.index_cast %66 : i32 to index
      %68 = memref.load %arg1[%67] : memref<32xi32, #tpu.memory_space<smem>>
      %69 = arith.index_cast %68 : i32 to index
      %c0_64 = arith.constant 0 : index
      %70 = vector.load %arg3[%69, %c0_64] : memref<17x128xf32, #tpu.memory_space<vmem>>, vector<1x128xf32>
      %71 = arith.addf %arg6, %70 : vector<1x128xf32>
      scf.yield %71 : vector<1x128xf32>
    }
    %c4_i32_11 = arith.constant 4 : i32
    %c1 = arith.constant 1 : index
    %c0_12 = arith.constant 0 : index
    %14 = vector.load %arg2[%c1, %c0_12] : memref<8x1xf32, #tpu.memory_space<vmem>>, vector<1x1xf32>
    %15 = vector.broadcast %14 : vector<1x1xf32> to vector<1x128xf32>
    %16 = arith.mulf %13, %15 : vector<1x128xf32>
    %c1_13 = arith.constant 1 : index
    %c0_14 = arith.constant 0 : index
    %17 = vector.load %arg4[%c1_13, %c0_14] : memref<8x128xf32, #tpu.memory_space<vmem>>, vector<1x128xf32>
    tpu.vector_store %arg4[%c1_13, %c0_14], %16 {strides = array<i32>} : memref<8x128xf32, #tpu.memory_space<vmem>>, vector<1x128xf32>,
    %c8_i32_15 = arith.constant 8 : i32
    %18 = arith.addi %1, %c8_i32_15 : i32
    %cst_16 = arith.constant 0.000000e+00 : f32
    %19 = vector.broadcast %cst_16 : f32 to vector<1x128xf32>
    %c0_i32_17 = arith.constant 0 : i32
    %c4_i32_18 = arith.constant 4 : i32
    %20 = arith.addi %c0_i32_17, %c4_i32_18 : i32
    %c1_i32_19 = arith.constant 1 : i32
    %21 = scf.for %arg5 = %c0_i32_17 to %20 step %c1_i32_19 iter_args(%arg6 = %19) -> (vector<1x128xf32>)  : i32 {
      %66 = arith.addi %18, %arg5 : i32
      %67 = arith.index_cast %66 : i32 to index
      %68 = memref.load %arg1[%67] : memref<32xi32, #tpu.memory_space<smem>>
      %69 = arith.index_cast %68 : i32 to index
      %c0_64 = arith.constant 0 : index
      %70 = vector.load %arg3[%69, %c0_64] : memref<17x128xf32, #tpu.memory_space<vmem>>, vector<1x128xf32>
      %71 = arith.addf %arg6, %70 : vector<1x128xf32>
      scf.yield %71 : vector<1x128xf32>
    }
    %c4_i32_20 = arith.constant 4 : i32
    %c2 = arith.constant 2 : index
    %c0_21 = arith.constant 0 : index
    %22 = vector.load %arg2[%c2, %c0_21] : memref<8x1xf32, #tpu.memory_space<vmem>>, vector<1x1xf32>
    %23 = vector.broadcast %22 : vector<1x1xf32> to vector<1x128xf32>
    %24 = arith.mulf %21, %23 : vector<1x128xf32>
    %c2_22 = arith.constant 2 : index
    %c0_23 = arith.constant 0 : index
    %25 = vector.load %arg4[%c2_22, %c0_23] : memref<8x128xf32, #tpu.memory_space<vmem>>, vector<1x128xf32>
    tpu.vector_store %arg4[%c2_22, %c0_23], %24 {strides = array<i32>} : memref<8x128xf32, #tpu.memory_space<vmem>>, vector<1x128xf32>,
    %c12_i32 = arith.constant 12 : i32
    %26 = arith.addi %1, %c12_i32 : i32
    %cst_24 = arith.constant 0.000000e+00 : f32
    %27 = vector.broadcast %cst_24 : f32 to vector<1x128xf32>
    %c0_i32_25 = arith.constant 0 : i32
    %c4_i32_26 = arith.constant 4 : i32
    %28 = arith.addi %c0_i32_25, %c4_i32_26 : i32
    %c1_i32_27 = arith.constant 1 : i32
    %29 = scf.for %arg5 = %c0_i32_25 to %28 step %c1_i32_27 iter_args(%arg6 = %27) -> (vector<1x128xf32>)  : i32 {
      %66 = arith.addi %26, %arg5 : i32
      %67 = arith.index_cast %66 : i32 to index
      %68 = memref.load %arg1[%67] : memref<32xi32, #tpu.memory_space<smem>>
      %69 = arith.index_cast %68 : i32 to index
      %c0_64 = arith.constant 0 : index
      %70 = vector.load %arg3[%69, %c0_64] : memref<17x128xf32, #tpu.memory_space<vmem>>, vector<1x128xf32>
      %71 = arith.addf %arg6, %70 : vector<1x128xf32>
      scf.yield %71 : vector<1x128xf32>
    }
    %c4_i32_28 = arith.constant 4 : i32
    %c3 = arith.constant 3 : index
    %c0_29 = arith.constant 0 : index
    %30 = vector.load %arg2[%c3, %c0_29] : memref<8x1xf32, #tpu.memory_space<vmem>>, vector<1x1xf32>
    %31 = vector.broadcast %30 : vector<1x1xf32> to vector<1x128xf32>
    %32 = arith.mulf %29, %31 : vector<1x128xf32>
    %c3_30 = arith.constant 3 : index
    %c0_31 = arith.constant 0 : index
    %33 = vector.load %arg4[%c3_30, %c0_31] : memref<8x128xf32, #tpu.memory_space<vmem>>, vector<1x128xf32>
    tpu.vector_store %arg4[%c3_30, %c0_31], %32 {strides = array<i32>} : memref<8x128xf32, #tpu.memory_space<vmem>>, vector<1x128xf32>,
    %c16_i32 = arith.constant 16 : i32
    %34 = arith.addi %1, %c16_i32 : i32
    %cst_32 = arith.constant 0.000000e+00 : f32
    %35 = vector.broadcast %cst_32 : f32 to vector<1x128xf32>
    %c0_i32_33 = arith.constant 0 : i32
    %c4_i32_34 = arith.constant 4 : i32
    %36 = arith.addi %c0_i32_33, %c4_i32_34 : i32
    %c1_i32_35 = arith.constant 1 : i32
    %37 = scf.for %arg5 = %c0_i32_33 to %36 step %c1_i32_35 iter_args(%arg6 = %35) -> (vector<1x128xf32>)  : i32 {
      %66 = arith.addi %34, %arg5 : i32
      %67 = arith.index_cast %66 : i32 to index
      %68 = memref.load %arg1[%67] : memref<32xi32, #tpu.memory_space<smem>>
      %69 = arith.index_cast %68 : i32 to index
      %c0_64 = arith.constant 0 : index
      %70 = vector.load %arg3[%69, %c0_64] : memref<17x128xf32, #tpu.memory_space<vmem>>, vector<1x128xf32>
      %71 = arith.addf %arg6, %70 : vector<1x128xf32>
      scf.yield %71 : vector<1x128xf32>
    }
    %c4_i32_36 = arith.constant 4 : i32
    %c4 = arith.constant 4 : index
    %c0_37 = arith.constant 0 : index
    %38 = vector.load %arg2[%c4, %c0_37] : memref<8x1xf32, #tpu.memory_space<vmem>>, vector<1x1xf32>
    %39 = vector.broadcast %38 : vector<1x1xf32> to vector<1x128xf32>
    %40 = arith.mulf %37, %39 : vector<1x128xf32>
    %c4_38 = arith.constant 4 : index
    %c0_39 = arith.constant 0 : index
    %41 = vector.load %arg4[%c4_38, %c0_39] : memref<8x128xf32, #tpu.memory_space<vmem>>, vector<1x128xf32>
    tpu.vector_store %arg4[%c4_38, %c0_39], %40 {strides = array<i32>} : memref<8x128xf32, #tpu.memory_space<vmem>>, vector<1x128xf32>,
    %c20_i32 = arith.constant 20 : i32
    %42 = arith.addi %1, %c20_i32 : i32
    %cst_40 = arith.constant 0.000000e+00 : f32
    %43 = vector.broadcast %cst_40 : f32 to vector<1x128xf32>
    %c0_i32_41 = arith.constant 0 : i32
    %c4_i32_42 = arith.constant 4 : i32
    %44 = arith.addi %c0_i32_41, %c4_i32_42 : i32
    %c1_i32_43 = arith.constant 1 : i32
    %45 = scf.for %arg5 = %c0_i32_41 to %44 step %c1_i32_43 iter_args(%arg6 = %43) -> (vector<1x128xf32>)  : i32 {
      %66 = arith.addi %42, %arg5 : i32
      %67 = arith.index_cast %66 : i32 to index
      %68 = memref.load %arg1[%67] : memref<32xi32, #tpu.memory_space<smem>>
      %69 = arith.index_cast %68 : i32 to index
      %c0_64 = arith.constant 0 : index
      %70 = vector.load %arg3[%69, %c0_64] : memref<17x128xf32, #tpu.memory_space<vmem>>, vector<1x128xf32>
      %71 = arith.addf %arg6, %70 : vector<1x128xf32>
      scf.yield %71 : vector<1x128xf32>
    }
    %c4_i32_44 = arith.constant 4 : i32
    %c5 = arith.constant 5 : index
    %c0_45 = arith.constant 0 : index
    %46 = vector.load %arg2[%c5, %c0_45] : memref<8x1xf32, #tpu.memory_space<vmem>>, vector<1x1xf32>
    %47 = vector.broadcast %46 : vector<1x1xf32> to vector<1x128xf32>
    %48 = arith.mulf %45, %47 : vector<1x128xf32>
    %c5_46 = arith.constant 5 : index
    %c0_47 = arith.constant 0 : index
    %49 = vector.load %arg4[%c5_46, %c0_47] : memref<8x128xf32, #tpu.memory_space<vmem>>, vector<1x128xf32>
    tpu.vector_store %arg4[%c5_46, %c0_47], %48 {strides = array<i32>} : memref<8x128xf32, #tpu.memory_space<vmem>>, vector<1x128xf32>,
    %c24_i32 = arith.constant 24 : i32
    %50 = arith.addi %1, %c24_i32 : i32
    %cst_48 = arith.constant 0.000000e+00 : f32
    %51 = vector.broadcast %cst_48 : f32 to vector<1x128xf32>
    %c0_i32_49 = arith.constant 0 : i32
    %c4_i32_50 = arith.constant 4 : i32
    %52 = arith.addi %c0_i32_49, %c4_i32_50 : i32
    %c1_i32_51 = arith.constant 1 : i32
    %53 = scf.for %arg5 = %c0_i32_49 to %52 step %c1_i32_51 iter_args(%arg6 = %51) -> (vector<1x128xf32>)  : i32 {
      %66 = arith.addi %50, %arg5 : i32
      %67 = arith.index_cast %66 : i32 to index
      %68 = memref.load %arg1[%67] : memref<32xi32, #tpu.memory_space<smem>>
      %69 = arith.index_cast %68 : i32 to index
      %c0_64 = arith.constant 0 : index
      %70 = vector.load %arg3[%69, %c0_64] : memref<17x128xf32, #tpu.memory_space<vmem>>, vector<1x128xf32>
      %71 = arith.addf %arg6, %70 : vector<1x128xf32>
      scf.yield %71 : vector<1x128xf32>
    }
    %c4_i32_52 = arith.constant 4 : i32
    %c6 = arith.constant 6 : index
    %c0_53 = arith.constant 0 : index
    %54 = vector.load %arg2[%c6, %c0_53] : memref<8x1xf32, #tpu.memory_space<vmem>>, vector<1x1xf32>
    %55 = vector.broadcast %54 : vector<1x1xf32> to vector<1x128xf32>
    %56 = arith.mulf %53, %55 : vector<1x128xf32>
    %c6_54 = arith.constant 6 : index
    %c0_55 = arith.constant 0 : index
    %57 = vector.load %arg4[%c6_54, %c0_55] : memref<8x128xf32, #tpu.memory_space<vmem>>, vector<1x128xf32>
    tpu.vector_store %arg4[%c6_54, %c0_55], %56 {strides = array<i32>} : memref<8x128xf32, #tpu.memory_space<vmem>>, vector<1x128xf32>,
    %c28_i32 = arith.constant 28 : i32
    %58 = arith.addi %1, %c28_i32 : i32
    %cst_56 = arith.constant 0.000000e+00 : f32
    %59 = vector.broadcast %cst_56 : f32 to vector<1x128xf32>
    %c0_i32_57 = arith.constant 0 : i32
    %c4_i32_58 = arith.constant 4 : i32
    %60 = arith.addi %c0_i32_57, %c4_i32_58 : i32
    %c1_i32_59 = arith.constant 1 : i32
    %61 = scf.for %arg5 = %c0_i32_57 to %60 step %c1_i32_59 iter_args(%arg6 = %59) -> (vector<1x128xf32>)  : i32 {
      %66 = arith.addi %58, %arg5 : i32
      %67 = arith.index_cast %66 : i32 to index
      %68 = memref.load %arg1[%67] : memref<32xi32, #tpu.memory_space<smem>>
      %69 = arith.index_cast %68 : i32 to index
      %c0_64 = arith.constant 0 : index
      %70 = vector.load %arg3[%69, %c0_64] : memref<17x128xf32, #tpu.memory_space<vmem>>, vector<1x128xf32>
      %71 = arith.addf %arg6, %70 : vector<1x128xf32>
      scf.yield %71 : vector<1x128xf32>
    }
    %c4_i32_60 = arith.constant 4 : i32
    %c7 = arith.constant 7 : index
    %c0_61 = arith.constant 0 : index
    %62 = vector.load %arg2[%c7, %c0_61] : memref<8x1xf32, #tpu.memory_space<vmem>>, vector<1x1xf32>
    %63 = vector.broadcast %62 : vector<1x1xf32> to vector<1x128xf32>
    %64 = arith.mulf %61, %63 : vector<1x128xf32>
    %c7_62 = arith.constant 7 : index
    %c0_63 = arith.constant 0 : index
    %65 = vector.load %arg4[%c7_62, %c0_63] : memref<8x128xf32, #tpu.memory_space<vmem>>, vector<1x128xf32>
    tpu.vector_store %arg4[%c7_62, %c0_63], %64 {strides = array<i32>} : memref<8x128xf32, #tpu.memory_space<vmem>>, vector<1x128xf32>,
    return
  }
  func.func @transform_0(%arg0: i32, %arg1: memref<32xi32, #tpu.memory_space<smem>>) -> (i32, i32) {
    %c0_i32 = arith.constant 0 : i32
    %c0_i32_0 = arith.constant 0 : i32
    return %arg0, %c0_i32 : i32, i32
  }
  func.func @transform_1(%arg0: i32, %arg1: memref<32xi32, #tpu.memory_space<smem>>) -> (i32, i32) {
    %c0_i32 = arith.constant 0 : i32
    %c0_i32_0 = arith.constant 0 : i32
    %c0_i32_1 = arith.constant 0 : i32
    return %c0_i32, %c0_i32_0 : i32, i32
  }
  func.func @transform_2(%arg0: i32, %arg1: memref<32xi32, #tpu.memory_space<smem>>) -> (i32, i32) {
    %c0_i32 = arith.constant 0 : i32
    %c0_i32_0 = arith.constant 0 : i32
    return %arg0, %c0_i32 : i32, i32
  }
}

</mosaic_0001>

<bundles_post_ra>
// kernel: tpu_custom_call.1
= control target key start
LH: loop header
LB: loop body
LE: loop exit
PB: predicated region body
PF: predicated region fallthrough
CT: control target
= control target key end

     0   :  { %s630_s15 = smov [#allocation3]   ;;  %s697_s0 = inlined_call_operand.vmem [shape: s32[32], index: 0, kind: input, shape index: {}]   ;;  %s698_s1 = inlined_call_operand.vmem [shape: f32[8,1], index: 1, kind: input, shape index: {}]   ;;  %s699_s2 = inlined_call_operand.hbm [shape: f32[17,128], index: 2, kind: input, shape index: {}]   ;;  %s700_s3 = inlined_call_operand.hbm [shape: f32[8,128], index: 3, kind: output, shape index: {}]  }
   0x1   :  { %s9_s14 = sshll.u32 %s697_s0, 4  ;;  %s10_s14 = int_to_ptr.vmem [resolvable:$true] %s9_s14 }
   0x2   :  { %12 = dma.vmem_to_smem %s10_s14, 16, %s630_s15, [#allocation2] }
   0x3   :  { %560 = dma.done.wait [#allocation2], 16 }
   0x4   :  { %561 = vsyncadd [#allocation2], 4294967280 }
   0x5   :  { %15 = sfence }
   0x6   :  { %16 = vsyncpa [#allocation5], 0 }
   0x7   :  { %17 = vsyncpa [#allocation6], 0  ;;  %s24_s18 = sshll.u32 %s699_s2, 4  ;;  %s631_s19 = smov [#allocation4]   ;;  %s25_s18 = int_to_ptr.hbm [resolvable:$true] %s24_s18 }
   0x8   :  { %s26_s20 = sshll.u32 %s631_s19, 4  ;;  %s632_s21 = smov 128   ;;  %s27_s20 = int_to_ptr.vmem [resolvable:$true] %s26_s20 }
   0x9   :  { %s633_s22 = smov 8  }
   0xa   :  { %32 = dma.hbm_to_vmem [thread:$0]  %s25_s18, 384, %s27_s20, [#allocation5], %s632_s21, %s632_s21, %s633_s22  }
   0xb   :  { %562 = dma.done.wait [#allocation5], 384  }
   0xc   :  { %563 = vsyncadd [#allocation5], 4294966912  ;;  %v566_v0 = vmov 0.0   ;;  %s570_s0 = smov 0  }
   0xd LB: > { %s46_s23 = sld [smem:[#allocation3 + %s572_s0]]  ;;  %s43_s0 = sadd.s32 1, %s572_s0   ;;  %s572_s0 = sphi %s570_s0, %s43_s0   ;;  %v568_v0 = vphi %v566_v0, %v567_v0  }
   0xe   : > { %p40_p0 = scmp.ge.s32.totalorder %s43_s0, 4  }
   0xf   :  { %v50_v3 = vld [vmem:[%s698_s1] sm:$0x1] (%p40_p0)  ;;  %v634_v4 = vmov (%p40_p0), 0   ;;  %v574_v7 = vmov (%p40_p0), 0.0   ;;  %s578_s26 = smov (%p40_p0), 0  }
  0x10   :  { %428 = vset.pattern.permute.xlu0 (%p40_p0), %v634_v4 }
  0x11   :  { %53 = vperm.xlu0 (%p40_p0), %428, %v50_v3  }
  0x13   : > { %s47_s24 = scalar_lea.vmem [#allocation4], %s46_s23  ;;  %42 = sbr.rel (!%p40_p0) target bundleno = 13 (0xd), region = 96 }
  0x14   : > { %v48_v1 = vld [vmem:[%s47_s24] sm:$0x1] }
  0x15   : > { %v49_v2 = vadd.f32 %v568_v0, %v48_v1  }
  0x17   : > { %v567_v0 = vmov %v49_v2  }
  0x83   :  { %v54_v5 = vpop.permute.xlu0 %53 }
  0x84   :  { %v56_v6 = vmul.f32 %v54_v5, %v49_v2 }
  0x86   :  { %57 = vst [vmem:[#allocation7] sm:$0x1] %v56_v6 }
  0x87 LB: > { %s66_s27 = sadd.s32 4, %s580_s26  ;;  %s64_s26 = sadd.s32 1, %s580_s26   ;;  %s580_s26 = sphi %s578_s26, %s64_s26   ;;  %v576_v7 = vphi %v574_v7, %v575_v7  }
  0x88   : > { %s67_s28 = sld [smem:[#allocation3 + %s66_s27]]  ;;  %p61_p1 = scmp.ge.s32.totalorder %s64_s26, 4  }
  0x89   :  { %429 = vset.pattern.permute.xlu0 (%p61_p1), %v634_v4  ;;  %v71_v10 = vld [vmem:[%s698_s1 + $0x1] sm:$0x1] (%p61_p1)  ;;  %v582_v13 = vmov (%p61_p1), 0.0   ;;  %s586_s5 = smov (%p61_p1), 0  }
  0x8a   :  { %74 = vperm.xlu0 (%p61_p1), %429, %v71_v10  }
  0x8e   : > { %s68_s29 = scalar_lea.vmem [#allocation4], %s67_s28  ;;  %63 = sbr.rel (!%p61_p1) target bundleno = 135 (0x87), region = 107 }
  0x8f   : > { %v69_v8 = vld [vmem:[%s68_s29] sm:$0x1] }
  0x90   : > { %v70_v9 = vadd.f32 %v576_v7, %v69_v8  }
  0x92   : > { %v575_v7 = vmov %v70_v9  }
  0xfc   :  { %v75_v11 = vpop.permute.xlu0 %74 }
  0xfd   :  { %v77_v12 = vmul.f32 %v75_v11, %v70_v9 }
  0xff   :  { %78 = vst [vmem:[#allocation7 + $0x1] sm:$0x1] %v77_v12 }
 0x100 LB: > { %s87_s6 = sadd.s32 8, %s588_s5  ;;  %s85_s5 = sadd.s32 1, %s588_s5   ;;  %s588_s5 = sphi %s586_s5, %s85_s5   ;;  %v584_v13 = vphi %v582_v13, %v583_v13  }
 0x101   : > { %s88_s7 = sld [smem:[#allocation3 + %s87_s6]]  ;;  %p82_p2 = scmp.ge.s32.totalorder %s85_s5, 4  }
 0x102   :  { %430 = vset.pattern.permute.xlu0 (%p82_p2), %v634_v4  ;;  %v92_v16 = vld [vmem:[%s698_s1 + $0x2] sm:$0x1] (%p82_p2)  ;;  %v590_v19 = vmov (%p82_p2), 0.0   ;;  %s594_s11 = smov (%p82_p2), 0  }
 0x103   :  { %95 = vperm.xlu0 (%p82_p2), %430, %v92_v16  }
 0x107   : > { %s89_s8 = scalar_lea.vmem [#allocation4], %s88_s7  ;;  %84 = sbr.rel (!%p82_p2) target bundleno = 256 (0x100), region = 118 }
 0x108   : > { %v90_v14 = vld [vmem:[%s89_s8] sm:$0x1] }
 0x109   : > { %v91_v15 = vadd.f32 %v584_v13, %v90_v14  }
 0x10b   : > { %v583_v13 = vmov %v91_v15  }
 0x175   :  { %v96_v17 = vpop.permute.xlu0 %95 }
 0x176   :  { %v98_v18 = vmul.f32 %v96_v17, %v91_v15 }
 0x178   :  { %99 = vst [vmem:[#allocation7 + $0x2] sm:$0x1] %v98_v18 }
 0x179 LB: > { %s108_s12 = sadd.s32 12, %s596_s11  ;;  %s106_s11 = sadd.s32 1, %s596_s11   ;;  %s596_s11 = sphi %s594_s11, %s106_s11   ;;  %v592_v19 = vphi %v590_v19, %v591_v19  }
 0x17a   : > { %s109_s13 = sld [smem:[#allocation3 + %s108_s12]]  ;;  %p103_p3 = scmp.ge.s32.totalorder %s106_s11, 4  }
 0x17b   :  { %431 = vset.pattern.permute.xlu0 (%p103_p3), %v634_v4  ;;  %v113_v22 = vld [vmem:[%s698_s1 + $0x3] sm:$0x1] (%p103_p3)  ;;  %v598_v25 = vmov (%p103_p3), 0.0   ;;  %s602_s17 = smov (%p103_p3), 0  }
 0x17c   :  { %116 = vperm.xlu0 (%p103_p3), %431, %v113_v22  }
 0x180   : > { %s110_s14 = scalar_lea.vmem [#allocation4], %s109_s13  ;;  %105 = sbr.rel (!%p103_p3) target bundleno = 377 (0x179), region = 129 }
 0x181   : > { %v111_v20 = vld [vmem:[%s110_s14] sm:$0x1] }
 0x182   : > { %v112_v21 = vadd.f32 %v592_v19, %v111_v20  }
 0x184   : > { %v591_v19 = vmov %v112_v21  }
 0x1ee   :  { %v117_v23 = vpop.permute.xlu0 %116 }
 0x1ef   :  { %v119_v24 = vmul.f32 %v117_v23, %v112_v21 }
 0x1f1   :  { %120 = vst [vmem:[#allocation7 + $0x3] sm:$0x1] %v119_v24 }
 0x1f2 LB: > { %s129_s18 = sadd.s32 16, %s604_s17  ;;  %s127_s17 = sadd.s32 1, %s604_s17   ;;  %s604_s17 = sphi %s602_s17, %s127_s17   ;;  %v600_v25 = vphi %v598_v25, %v599_v25  }
 0x1f3   : > { %s130_s19 = sld [smem:[#allocation3 + %s129_s18]]  ;;  %p124_p4 = scmp.ge.s32.totalorder %s127_s17, 4  }
 0x1f4   :  { %432 = vset.pattern.permute.xlu0 (%p124_p4), %v634_v4  ;;  %v134_v28 = vld [vmem:[%s698_s1 + $0x4] sm:$0x1] (%p124_p4)  ;;  %v606_v31 = vmov (%p124_p4), 0.0   ;;  %s610_s0 = smov (%p124_p4), 0  }
 0x1f5   :  { %137 = vperm.xlu0 (%p124_p4), %432, %v134_v28  }
 0x1f9   : > { %s131_s20 = scalar_lea.vmem [#allocation4], %s130_s19  ;;  %126 = sbr.rel (!%p124_p4) target bundleno = 498 (0x1f2), region = 140 }
 0x1fa   : > { %v132_v26 = vld [vmem:[%s131_s20] sm:$0x1] }
 0x1fb   : > { %v133_v27 = vadd.f32 %v600_v25, %v132_v26  }
 0x1fd   : > { %v599_v25 = vmov %v133_v27  }
 0x267   :  { %v138_v29 = vpop.permute.xlu0 %137 }
 0x268   :  { %v140_v30 = vmul.f32 %v138_v29, %v133_v27 }
 0x26a   :  { %141 = vst [vmem:[#allocation7 + $0x4] sm:$0x1] %v140_v30 }
 0x26b LB: > { %s150_s23 = sadd.s32 20, %s612_s0  ;;  %s148_s0 = sadd.s32 1, %s612_s0   ;;  %s612_s0 = sphi %s610_s0, %s148_s0   ;;  %v608_v31 = vphi %v606_v31, %v607_v31  }
 0x26c   : > { %s151_s24 = sld [smem:[#allocation3 + %s150_s23]]  ;;  %p145_p5 = scmp.ge.s32.totalorder %s148_s0, 4  }
 0x26d   :  { %433 = vset.pattern.permute.xlu0 (%p145_p5), %v634_v4  ;;  %v155_v34 = vld [vmem:[%s698_s1 + $0x5] sm:$0x1] (%p145_p5)  ;;  %v614_v37 = vmov (%p145_p5), 0.0   ;;  %s618_s27 = smov (%p145_p5), 0  }
 0x26e   :  { %158 = vperm.xlu0 (%p145_p5), %433, %v155_v34  }
 0x272   : > { %s152_s2 = scalar_lea.vmem [#allocation4], %s151_s24  ;;  %147 = sbr.rel (!%p145_p5) target bundleno = 619 (0x26b), region = 151 }
 0x273   : > { %v153_v32 = vld [vmem:[%s152_s2] sm:$0x1] }
 0x274   : > { %v154_v33 = vadd.f32 %v608_v31, %v153_v32  }
 0x276   : > { %v607_v31 = vmov %v154_v33  }
 0x2e0   :  { %v159_v35 = vpop.permute.xlu0 %158 }
 0x2e1   :  { %v161_v36 = vmul.f32 %v159_v35, %v154_v33 }
 0x2e3   :  { %162 = vst [vmem:[#allocation7 + $0x5] sm:$0x1] %v161_v36 }
 0x2e4 LB: > { %s171_s28 = sadd.s32 24, %s620_s27  ;;  %s169_s27 = sadd.s32 1, %s620_s27   ;;  %s620_s27 = sphi %s618_s27, %s169_s27   ;;  %v616_v37 = vphi %v614_v37, %v615_v37  }
 0x2e5   : > { %s172_s29 = sld [smem:[#allocation3 + %s171_s28]]  ;;  %p166_p6 = scmp.ge.s32.totalorder %s169_s27, 4  }
 0x2e6   :  { %434 = vset.pattern.permute.xlu0 (%p166_p6), %v634_v4  ;;  %v176_v40 = vld [vmem:[%s698_s1 + $0x6] sm:$0x1] (%p166_p6)  ;;  %v622_v43 = vmov (%p166_p6), 0.0   ;;  %s626_s6 = smov (%p166_p6), 0  }
 0x2e7   :  { %179 = vperm.xlu0 (%p166_p6), %434, %v176_v40  }
 0x2eb   : > { %s173_s30 = scalar_lea.vmem [#allocation4], %s172_s29  ;;  %168 = sbr.rel (!%p166_p6) target bundleno = 740 (0x2e4), region = 162 }
 0x2ec   : > { %v174_v38 = vld [vmem:[%s173_s30] sm:$0x1] }
 0x2ed   : > { %v175_v39 = vadd.f32 %v616_v37, %v174_v38  }
 0x2ef   : > { %v615_v37 = vmov %v175_v39  }
 0x359   :  { %v180_v41 = vpop.permute.xlu0 %179 }
 0x35a   :  { %v182_v42 = vmul.f32 %v180_v41, %v175_v39 }
 0x35c   :  { %183 = vst [vmem:[#allocation7 + $0x6] sm:$0x1] %v182_v42 }
 0x35d LB: > { %s192_s7 = sadd.s32 28, %s628_s6  ;;  %s190_s6 = sadd.s32 1, %s628_s6   ;;  %s628_s6 = sphi %s626_s6, %s190_s6   ;;  %v624_v43 = vphi %v622_v43, %v623_v43  }
 0x35e   : > { %s193_s8 = sld [smem:[#allocation3 + %s192_s7]]  ;;  %p187_p7 = scmp.ge.s32.totalorder %s190_s6, 4  }
 0x35f   :  { %435 = vset.pattern.permute.xlu0 (%p187_p7), %v634_v4  ;;  %v197_v46 = vld [vmem:[%s698_s1 + $0x7] sm:$0x1] (%p187_p7)  ;;  %s635_s12 = smov (%p187_p7), [#allocation7]   ;;  %s212_s16 = sshll.u32 (%p187_p7), %s700_s3, 4  ;;  %s213_s16 = int_to_ptr.hbm [resolvable:$true] %s212_s16 }
 0x360   :  { %200 = vperm.xlu0 (%p187_p7), %435, %v197_v46   ;;  %s210_s13 = sshll.u32 (%p187_p7), %s635_s12, 4  ;;  %s211_s13 = int_to_ptr.vmem [resolvable:$true] %s210_s13 }
 0x364   : > { %s194_s9 = scalar_lea.vmem [#allocation4], %s193_s8  ;;  %189 = sbr.rel (!%p187_p7) target bundleno = 861 (0x35d), region = 173 }
 0x365   : > { %v195_v44 = vld [vmem:[%s194_s9] sm:$0x1] }
 0x366   : > { %v196_v45 = vadd.f32 %v624_v43, %v195_v44  }
 0x368   : > { %v623_v43 = vmov %v196_v45  }
 0x3d2   :  { %v201_v47 = vpop.permute.xlu0 %200 }
 0x3d3   :  { %v203_v48 = vmul.f32 %v201_v47, %v196_v45 }
 0x3d5   :  { %204 = vst [vmem:[#allocation7 + $0x7] sm:$0x1] %v203_v48 }
 0x3d6   :  { %215 = dma.vmem_to_hbm [thread:$0]  %s211_s13, 128, %s213_s16, [#allocation6]  }
 0x3d7   :  { %564 = dma.done.wait [#allocation6], 128  }
 0x3d8   :  { %565 = vsyncadd [#allocation6], 4294967168 }
 0x3d9   :  { %220 = vsyncpa [#allocation5], 1 }
 0x3da   :  { %221 = vsyncpa [#allocation6], 1 }

</bundles_post_ra>
